<compile_context>
chip_gen: v6e
topology: v6e:2x2x1
jax: 0.10.0
libtpu: 0.0.40
codegen_flags: <defaults>
</compile_context>

<pallas_src>
import functools

import jax
import jax.numpy as jnp
from jax import lax
from jax.experimental import pallas as pl
from jax.experimental.pallas import tpu as pltpu

LANE = 128                 # vreg lane width
SUBLANE = 8                # vreg sublane height
BLOCK_BYTES = 2 << 20      # ~2 MiB native per input per block
VMEM_LIMIT_BYTES = 32 << 20  # headroom for f32 temporaries of wide bf16 blocks


def _device_kind():
    try:
        return jax.devices()[0].device_kind.lower()
    except Exception:
        return ""


def _mse_kernel(x_ref, t_ref, out_ref, acc_ref, *,
                block_rows, total_rows, steps_per_split, needs_mask):
    """Accumulate a per-split sum((x - t)^2) into out_ref[(split, 0)]."""
    c = pl.program_id(0)   # split axis (CORE_PARALLEL on v7x, extent 1 elsewhere)
    i = pl.program_id(1)   # reduction steps within this split

    @pl.when(i == 0)
    def _():
        acc_ref[...] = jnp.zeros_like(acc_ref)

    # Native-dtype tiles off HBM; cast to f32 on the VPU (free under the DMA).
    d = x_ref[...].astype(jnp.float32) - t_ref[...].astype(jnp.float32)
    sq = d * d

    if needs_mask:
        # Only the globally-last block can be ragged (reads OOB rows); every
        # other block takes the unmasked path (no iota/cmp/select filler).
        is_tail = jnp.logical_and(c == pl.num_programs(0) - 1,
                                  i == pl.num_programs(1) - 1)

        @pl.when(is_tail)
        def _():
            row0 = (c * steps_per_split + i) * block_rows
            row_ids = row0 + lax.broadcasted_iota(jnp.int32, sq.shape, 0)
            sq_m = jnp.where(row_ids < total_rows, sq, 0.0)
            acc_ref[...] += jnp.sum(sq_m.reshape(-1, SUBLANE, LANE), axis=0)

        @pl.when(jnp.logical_not(is_tail))
        def _():
            acc_ref[...] += jnp.sum(sq.reshape(-1, SUBLANE, LANE), axis=0)
    else:
        # VALU-only partial reduction into a vreg-shaped accumulator; the
        # cross-lane (XLU) reduce is deferred to once per split.
        acc_ref[...] += jnp.sum(sq.reshape(-1, SUBLANE, LANE), axis=0)

    @pl.when(i == pl.num_programs(1) - 1)
    def _():
        out_ref[0, 0] = jnp.sum(acc_ref[...])


def content_loss(inp, target):
    """MSE loss between `inp` and `target` (same shape), computed in Pallas."""
    assert inp.shape == target.shape, "ContentLoss requires matching shapes"
    n = inp.size

    x = inp.reshape(-1)      # free reshape of a contiguous array
    t = target.reshape(-1)

    # Ragged (non lane-aligned) tail: do NOT pad the full arrays in HBM.
    # Run the kernel on the aligned prefix; the <128-element tail's SSE is a
    # tiny jnp reduction in the wrapper.
    rem = n % LANE
    n_main = n - rem
    if rem:
        xt = x[n_main:].astype(jnp.float32)
        tt = t[n_main:].astype(jnp.float32)
        tail_sse = jnp.sum((xt - tt) ** 2)
        x = x[:n_main]
        t = t[:n_main]
    else:
        tail_sse = jnp.float32(0.0)

    rows = n_main // LANE
    if rows == 0:
        # Entire input is smaller than one lane row; pure-jnp fallback.
        return tail_sse / jnp.float32(n)

    x2 = x.reshape(rows, LANE)
    t2 = t.reshape(rows, LANE)

    # Block sizing in bytes: ~2 MiB native per input per block regardless of
    # dtype (f32 -> 4096 rows, bf16 -> 8192 rows), always a multiple of 8 rows.
    itemsize = jnp.dtype(inp.dtype).itemsize
    max_rows = max(SUBLANE,
                   (BLOCK_BYTES // (LANE * itemsize)) // SUBLANE * SUBLANE)

    # 2-way split only on v7x (2 TensorCores); v5e/v6e get a single split so
    # the leading axis is pure pass-through (extent 1).
    is_v7 = "v7" in _device_kind()
    if is_v7 and rows > SUBLANE:
        # Choose block_rows so the block count splits EVENLY across the two
        # cores -> no clamped duplicate-block DMA (no wasted HBM traffic).
        nblocks = max(2, pl.cdiv(rows, max_rows))
        nblocks += nblocks % 2
        block_rows = min(max_rows,
                         pl.cdiv(pl.cdiv(rows, nblocks), SUBLANE) * SUBLANE)
        total_blocks = pl.cdiv(rows, block_rows)
        num_splits = 2 if total_blocks % 2 == 0 else 1  # safety fallback
    else:
        block_rows = min(max_rows, pl.cdiv(rows, SUBLANE) * SUBLANE)
        total_blocks = pl.cdiv(rows, block_rows)
        num_splits = 1
    steps_per_split = total_blocks // num_splits  # exact: no duplicate blocks

    needs_mask = (rows % block_rows) != 0

    kernel = functools.partial(
        _mse_kernel,
        block_rows=block_rows,
        total_rows=rows,
        steps_per_split=steps_per_split,
        needs_mask=needs_mask,
    )

    if num_splits == 2:
        # Only CORE_PARALLEL actually shards a grid axis across v7x's 2 TCs.
        dim_sems = (pltpu.CORE_PARALLEL, pltpu.ARBITRARY)
    else:
        dim_sems = (pltpu.ARBITRARY, pltpu.ARBITRARY)

    def in_index(c, i):
        return (c * steps_per_split + i, 0)

    partial_sums = pl.pallas_call(
        kernel,
        out_shape=jax.ShapeDtypeStruct((num_splits, 1), jnp.float32),
        grid_spec=pltpu.PrefetchScalarGridSpec(
            num_scalar_prefetch=0,
            grid=(num_splits, steps_per_split),
            in_specs=[
                pl.BlockSpec((block_rows, LANE), in_index),
                pl.BlockSpec((block_rows, LANE), in_index),
            ],
            out_specs=pl.BlockSpec(
                (1, 1), lambda c, i: (c, 0), memory_space=pltpu.SMEM),
            scratch_shapes=[pltpu.VMEM((SUBLANE, LANE), jnp.float32)],
        ),
        compiler_params=pltpu.CompilerParams(
            dimension_semantics=dim_sems,
            vmem_limit_bytes=VMEM_LIMIT_BYTES,
        ),
        cost_estimate=pl.CostEstimate(
            flops=3 * n,
            transcendentals=0,
            bytes_accessed=int(x2.nbytes + t2.nbytes),
        ),
    )(x2, t2)

    return (jnp.sum(partial_sums) + tail_sse) / jnp.float32(n)


if __name__ == "__main__":
    key = jax.random.PRNGKey(0)
    k_inp, k_tgt = jax.random.split(key)

    # Small NCHW feature maps, consistent with style-transfer content features.
    x = jax.random.normal(k_inp, (2, 4, 16, 16), dtype=jnp.float32)
    target = jax.random.normal(k_tgt, (2, 4, 16, 16), dtype=jnp.float32)

    loss = content_loss(x, target)
    jax.block_until_ready(loss)
    ref = jnp.mean((x - target) ** 2)
    assert jnp.allclose(loss, ref, rtol=1e-6, atol=1e-6), (loss, ref)

    # Multi-block path: exercises accumulation + gated ragged-block row mask.
    k1, k2 = jax.random.split(k_tgt)
    xb = jax.random.normal(k1, (3, 64, 64, 64), dtype=jnp.float32)
    tb = jax.random.normal(k2, (3, 64, 64, 64), dtype=jnp.float32)
    loss_b = content_loss(xb, tb)
    jax.block_until_ready(loss_b)
    ref_b = jnp.mean((xb - tb) ** 2)
    assert jnp.allclose(loss_b, ref_b, rtol=1e-5, atol=1e-6), (loss_b, ref_b)

    # bf16 + non-lane-aligned size: native-dtype streaming, byte-sized blocks,
    # pad-free ragged-tail path (prefix kernel + tiny jnp tail SSE).
    k3, k4 = jax.random.split(k1)
    xc = jax.random.normal(k3, (2, 3, 17, 19), dtype=jnp.bfloat16)
    tc = jax.random.normal(k4, (2, 3, 17, 19), dtype=jnp.bfloat16)
    loss_c = content_loss(xc, tc)
    jax.block_until_ready(loss_c)
    ref_c = jnp.mean((xc.astype(jnp.float32) - tc.astype(jnp.float32)) ** 2)
    assert jnp.allclose(loss_c, ref_c, rtol=1e-5, atol=1e-6), (loss_c, ref_c)

    # Sub-lane-sized input: pure tail path (no kernel launch).
    k5, k6 = jax.random.split(k3)
    xd = jax.random.normal(k5, (1, 1, 5, 7), dtype=jnp.float32)
    td = jax.random.normal(k6, (1, 1, 5, 7), dtype=jnp.float32)
    loss_d = content_loss(xd, td)
    jax.block_until_ready(loss_d)
    ref_d = jnp.mean((xd - td) ** 2)
    assert jnp.allclose(loss_d, ref_d, rtol=1e-6, atol=1e-6), (loss_d, ref_d)

    print("KERNEL_OK")
</pallas_src>

<mosaic_0001>
module attributes {stable_mosaic.version = 11 : i64} {
  func.func @_mse_kernel(%arg0: i32, %arg1: i32, %arg2: memref<16x128xf32, #tpu.memory_space<vmem>>, %arg3: memref<16x128xf32, #tpu.memory_space<vmem>>, %arg4: memref<1x1xf32, #tpu.memory_space<smem>>, %arg5: memref<8x128xf32, #tpu.memory_space<vmem>>) attributes {dimension_semantics = [#tpu.dimension_semantics<arbitrary>, #tpu.dimension_semantics<arbitrary>], iteration_bounds = array<i64: 1, 1>, scalar_prefetch = 0 : i64, scratch_operands = 1 : i64, tpu.core_type = #tpu.core_type<tc>, window_params = [{transform_indices = @transform_0, window_bounds = array<i64: 16, 128>}, {transform_indices = @transform_1, window_bounds = array<i64: 16, 128>}, {transform_indices = @transform_2, window_bounds = array<i64: 1, 1>}]} {
    %c0_i32 = arith.constant 0 : i32
    %0 = arith.cmpi eq, %arg1, %c0_i32 : i32
    %1 = arith.extui %0 : i1 to i32
    %c0_i32_0 = arith.constant 0 : i32
    %2 = arith.cmpi ne, %1, %c0_i32_0 : i32
    scf.if %2 {
      %cst_10 = arith.constant 0.000000e+00 : f32
      %15 = vector.broadcast %cst_10 : f32 to vector<8x128xf32>
      %c0_11 = arith.constant 0 : index
      %c0_12 = arith.constant 0 : index
      %16 = vector.load %arg5[%c0_11, %c0_12] : memref<8x128xf32, #tpu.memory_space<vmem>>, vector<8x128xf32>
      tpu.vector_store %arg5[%c0_11, %c0_12], %15 {strides = array<i32>} : memref<8x128xf32, #tpu.memory_space<vmem>>, vector<8x128xf32>,
    } else {
    }
    %c0 = arith.constant 0 : index
    %c0_1 = arith.constant 0 : index
    %3 = vector.load %arg2[%c0, %c0_1] : memref<16x128xf32, #tpu.memory_space<vmem>>, vector<16x128xf32>
    %c0_2 = arith.constant 0 : index
    %c0_3 = arith.constant 0 : index
    %4 = vector.load %arg3[%c0_2, %c0_3] : memref<16x128xf32, #tpu.memory_space<vmem>>, vector<16x128xf32>
    %5 = arith.subf %3, %4 : vector<16x128xf32>
    %6 = arith.mulf %5, %5 : vector<16x128xf32>
    %c0_4 = arith.constant 0 : index
    %c0_5 = arith.constant 0 : index
    %7 = vector.load %arg5[%c0_4, %c0_5] : memref<8x128xf32, #tpu.memory_space<vmem>>, vector<8x128xf32>
    %8 = vector.shape_cast %6 : vector<16x128xf32> to vector<2x8x128xf32>
    %cst = arith.constant dense<0.000000e+00> : vector<8x128xf32>
    %9 = vector.multi_reduction <add>, %8, %cst [0] : vector<2x8x128xf32> to vector<8x128xf32>
    %10 = arith.addf %7, %9 : vector<8x128xf32>
    %c0_6 = arith.constant 0 : index
    %c0_7 = arith.constant 0 : index
    %11 = vector.load %arg5[%c0_6, %c0_7] : memref<8x128xf32, #tpu.memory_space<vmem>>, vector<8x128xf32>
    tpu.vector_store %arg5[%c0_6, %c0_7], %10 {strides = array<i32>} : memref<8x128xf32, #tpu.memory_space<vmem>>, vector<8x128xf32>,
    %c0_i32_8 = arith.constant 0 : i32
    %12 = arith.cmpi eq, %arg1, %c0_i32_8 : i32
    %13 = arith.extui %12 : i1 to i32
    %c0_i32_9 = arith.constant 0 : i32
    %14 = arith.cmpi ne, %13, %c0_i32_9 : i32
    scf.if %14 {
      %c0_10 = arith.constant 0 : index
      %c0_11 = arith.constant 0 : index
      %15 = vector.load %arg5[%c0_10, %c0_11] : memref<8x128xf32, #tpu.memory_space<vmem>>, vector<8x128xf32>
      %16 = vector.shape_cast %15 : vector<8x128xf32> to vector<1x8x128xf32>
      %cst_12 = arith.constant dense<0.000000e+00> : vector<1xf32>
      %17 = vector.multi_reduction <add>, %16, %cst_12 [1, 2] : vector<1x8x128xf32> to vector<1xf32>
      %18 = vector.shape_cast %17 : vector<1xf32> to vector<1x1x1xf32>
      %19 = vector.extract %18[0, 0, 0] : f32 from vector<1x1x1xf32>
      %c0_13 = arith.constant 0 : index
      %c0_14 = arith.constant 0 : index
      %20 = memref.load %arg4[%c0_13, %c0_14] : memref<1x1xf32, #tpu.memory_space<smem>>
      memref.store %19, %arg4[%c0_13, %c0_14] : memref<1x1xf32, #tpu.memory_space<smem>>
    } else {
    }
    return
  }
  func.func @transform_0(%arg0: i32, %arg1: i32) -> (i32, i32) {
    %c1_i32 = arith.constant 1 : i32
    %0 = arith.muli %arg0, %c1_i32 : i32
    %1 = arith.addi %0, %arg1 : i32
    %c0_i32 = arith.constant 0 : i32
    %c0_i32_0 = arith.constant 0 : i32
    return %1, %c0_i32 : i32, i32
  }
  func.func @transform_1(%arg0: i32, %arg1: i32) -> (i32, i32) {
    %c1_i32 = arith.constant 1 : i32
    %0 = arith.muli %arg0, %c1_i32 : i32
    %1 = arith.addi %0, %arg1 : i32
    %c0_i32 = arith.constant 0 : i32
    %c0_i32_0 = arith.constant 0 : i32
    return %1, %c0_i32 : i32, i32
  }
  func.func @transform_2(%arg0: i32, %arg1: i32) -> (i32, i32) {
    %c0_i32 = arith.constant 0 : i32
    %c0_i32_0 = arith.constant 0 : i32
    return %arg0, %c0_i32 : i32, i32
  }
}

</mosaic_0001>

<bundles_post_ra>
// kernel: tpu_custom_call.1
= control target key start
LH: loop header
LB: loop body
LE: loop exit
PB: predicated region body
PF: predicated region fallthrough
CT: control target
= control target key end

     0   :  { %7 = vsyncpa [#allocation4], 0  ;;  %s189_s0 = inlined_call_operand.hbm [shape: f32[16,128], index: 0, kind: input, shape index: {}]   ;;  %s190_s1 = inlined_call_operand.hbm [shape: f32[16,128], index: 1, kind: input, shape index: {}]   ;;  %s191_s2 = inlined_call_operand.hbm [shape: f32[1,1], index: 2, kind: output, shape index: {}]  }
   0x1   :  { %8 = vsyncpa [#allocation7], 0 }
   0x2   :  { %9 = vsyncpa [#allocation5], 0  ;;  %s160_s9 = smov [#allocation3]  }
   0x3   :  { %s19_s10 = sshll.u32 %s160_s9, 4  ;;  %s20_s10 = int_to_ptr.vmem [resolvable:$true] %s19_s10 }
   0x4   :  { %s114_s11 = scalar_lea.vmem %s20_s10, 256  ;;  %p119_p1 = scmp.lt.s32.totalorder %s20_s10, %s20_s10 }
   0x5   :  { %p115_p0 = scmp.ne.s32.totalorder %s20_s10, %s114_s11  ;;  %p120_p2 = scmp.lt.s32.totalorder %s114_s11, %s114_s11 }
   0x7   :  { %p121_p3 = por %p120_p2, %p119_p1 }
   0x9   :  { %p122_p4 = pnand %p121_p3, %p115_p0 }
   0xb   :  { %125 = shalt.err (!%p122_p4)
}
   0xc   :  { %s161_s12 = smov 128   ;;  %s162_s13 = smov 8  }
   0xd   :  { %25 = dma.hbm_to_vmem [thread:$0]  %s189_s0, 256, %s20_s10, [#allocation4], %s161_s12, %s161_s12, %s162_s13  }
   0xe   :  { %s163_s16 = smov [#allocation6]  }
   0xf   :  { %s35_s17 = sshll.u32 %s163_s16, 4  ;;  %s36_s17 = int_to_ptr.vmem [resolvable:$true] %s35_s17 }
  0x10   :  { %s134_s18 = scalar_lea.vmem %s36_s17, 256  ;;  %p139_p6 = scmp.lt.s32.totalorder %s36_s17, %s36_s17 }
  0x11   :  { %p135_p5 = scmp.ne.s32.totalorder %s36_s17, %s134_s18  ;;  %p140_p7 = scmp.lt.s32.totalorder %s134_s18, %s134_s18 }
  0x13   :  { %p141_p8 = por %p140_p7, %p139_p6 }
  0x15   :  { %p142_p9 = pnand %p141_p8, %p135_p5 }
  0x17   :  { %145 = shalt.err (!%p142_p9)
}
  0x18   :  { %41 = dma.hbm_to_vmem [thread:$0]  %s190_s1, 256, %s36_s17, [#allocation7], %s161_s12, %s161_s12, %s162_s13  }
  0x19   :  { %154 = dma.done.wait [#allocation4], 256  }
  0x1a   :  { %155 = vsyncadd [#allocation4], 4294967040 }
  0x1b   :  { %156 = dma.done.wait [#allocation7], 256  }
  0x1c   :  { %157 = vsyncadd [#allocation7], 4294967040  ;;  %v57_v0 = vld [vmem:[#allocation3] sm:$0xff]  ;;  %v58_v1 = vld [vmem:[#allocation3 + $0x8] sm:$0xff]  ;;  %s164_s1 = smov [#allocation8]  }
  0x1d   :  { %v59_v2 = vld [vmem:[#allocation6] sm:$0xff]  ;;  %v60_v3 = vld [vmem:[#allocation6 + $0x8] sm:$0xff] }
  0x1e   :  { %v61_v4 = vsub.f32 %v57_v0, %v59_v2  ;;  %v62_v5 = vsub.f32 %v58_v1, %v60_v3 }
  0x20   :  { %v63_v6 = vmul.f32 %v61_v4, %v61_v4  ;;  %v64_v7 = vmul.f32 %v62_v5, %v62_v5 }
  0x22   :  { %v66_v8 = vadd.f32 %v64_v7, %v63_v6 }
  0x24   :  { %73 = vadd.xlane.f32.xlu0 %v66_v8 }
  0xad   :  { %v74_v9 = vpop.xlane.xlu0 %73 }
  0xae   :  { %v75_v10 = vrot.slane %v74_v9, 4 }
  0xb0   :  { %v76_v11 = vadd.f32 %v75_v10, %v74_v9 }
  0xb2   :  { %v77_v12 = vrot.slane %v76_v11, 2 }
  0xb4   :  { %v78_v13 = vadd.f32 %v77_v12, %v76_v11 }
  0xb6   :  { %v79_v14 = vrot.slane %v78_v13, 1 }
  0xb8   :  { %v80_v15 = vadd.f32 %v79_v14, %v78_v13 }
  0xba   :  { %99 = vpush %v80_v15 }
  0xeb   :  { %s100_s0 = spop %99 }
  0xec   :  { %83 = sst [smem:[#allocation8]] %s100_s0 }
  0xed   :  { %91 = dma.smem_to_hbm %s164_s1, 16, %s191_s2, [#allocation5]  }
  0xee   :  { %158 = dma.done.wait [#allocation5], 16  }
  0xef   :  { %159 = vsyncadd [#allocation5], 4294967280 }
  0xf0   :  { %95 = sfence }
  0xf1   :  { %96 = vsyncpa [#allocation4], 1 }
  0xf2   :  { %97 = vsyncpa [#allocation7], 1 }
  0xf3   :  { %98 = vsyncpa [#allocation5], 1 }

</bundles_post_ra>
